<compile_context>
chip_gen: v7x
topology: tpu7x:2x2x1
jax: 0.10.0
libtpu: 0.0.40
codegen_flags: <defaults>
</compile_context>

<pallas_src>
import functools

import jax
import jax.numpy as jnp
from jax import lax
from jax.experimental import pallas as pl
from jax.experimental.pallas import tpu as pltpu

LEAKY_SLOPE = 0.1


def _leaky(v):
    return jnp.where(v > 0, v, LEAKY_SLOPE * v)


def basic_block_kernel(x_ref, w_ref, sb_ref, out_ref, *, H, W):
    Cp, L = x_ref.shape            # channels-major chunk: (Cp, images_per_chunk * H*W)
    HW = H * W

    x = x_ref[...]                                      # (Cp, L) f32, lane-dense

    # Folded BN params: 4 pages of (Cp, 1) in one fused operand.
    s1 = sb_ref[0]
    b1 = sb_ref[1]
    s2 = sb_ref[2]
    b2 = sb_ref[3]

    # Per-image flat spatial index as a single (1, L) lane row (chunks hold whole
    # images, so lane % HW is the in-image position).  Boundary-validity component
    # rows are hoisted once and combined per tap right before use (bounded live
    # ranges: never 9 full masks live across both convs).
    lane = lax.broadcasted_iota(jnp.int32, (1, L), 1)
    p = jnp.bitwise_and(lane, HW - 1) if (HW & (HW - 1)) == 0 else lane % HW
    ww = jnp.bitwise_and(p, W - 1) if (W & (W - 1)) == 0 else p % W
    hvalid = {-1: p >= W, 0: None, 1: p < (H - 1) * W}
    wvalid = {-1: ww >= 1, 0: None, 1: ww <= W - 2}

    def conv3x3(act, w):
        # act: (Cp, L) f32; w: (Cp, 9*Cp) bf16.  Single MXU push per conv.
        pieces = []
        for dh in (-1, 0, 1):
            for dw in (-1, 0, 1):
                shift = (-(dh * W + dw)) % L            # static lane rotation
                rolled = act if shift == 0 else pltpu.roll(act, shift, 1)
                mask = hvalid[dh]
                if wvalid[dw] is not None:
                    mask = wvalid[dw] if mask is None else jnp.logical_and(mask, wvalid[dw])
                if mask is not None:                    # center tap stays unmasked
                    rolled = jnp.where(mask, rolled, 0.0)
                pieces.append(rolled)
        patches = jnp.concatenate(pieces, axis=0)       # (9*Cp, L), sublane-aligned
        return jnp.dot(w, patches.astype(jnp.bfloat16),
                       preferred_element_type=jnp.float32)   # (Cp, L) f32

    a = _leaky(x * s1 + b1)                             # bn1 + leaky_relu
    y = conv3x3(a, w_ref[0])                            # conv1 (3x3, pad=1)
    z = _leaky(y * s2 + b2)                             # bn2 + leaky_relu
    o = conv3x3(z, w_ref[1])                            # conv2 (3x3, pad=1)
    out_ref[...] = o + x                                # residual (downsample is None)


def _round_up(v, m):
    return (v + m - 1) // m * m


def prepare_basic_block_params(w1_oihw, w2_oihw, bn1_scale, bn1_bias, bn2_scale, bn2_bias, Cp):
    """Flatten conv weights and pack folded BN params ONCE, outside the per-step path."""
    C = w1_oihw.shape[1]

    def flat_weight(w_oihw):
        # OIHW -> (Cp, 9*Cp) with K ordered (kh, kw, cin), matching the kernel's patches.
        w = jnp.transpose(w_oihw, (0, 2, 3, 1)).astype(jnp.float32)    # (Cout, 3, 3, Cin)
        wp = jnp.zeros((Cp, 3, 3, Cp), jnp.float32).at[:C, :, :, :C].set(w)
        return wp.reshape(Cp, 9 * Cp)

    w_packed = jnp.stack([flat_weight(w1_oihw), flat_weight(w2_oihw)], axis=0)
    w_packed = w_packed.astype(jnp.bfloat16)            # (2, Cp, 9*Cp)

    sb = jnp.zeros((4, Cp, 1), jnp.float32)
    for i, v in enumerate((bn1_scale, bn1_bias, bn2_scale, bn2_bias)):
        sb = sb.at[i, :C, 0].set(v.astype(jnp.float32))
    return w_packed, sb


def basic_block_apply_slab(x_slab, w_packed, sb, *, H, W, num_chunks):
    """Run the block on a padded channels-major slab (Cp, num_images*H*W).  The slab
    layout is preserved across calls so consecutive BasicBlocks chain without the
    NCHW pad/unpad round trip."""
    Cp, Ltot = x_slab.shape
    HW = H * W
    assert Ltot % (num_chunks * HW) == 0, "each lane chunk must hold whole images"
    Lc = Ltot // num_chunks
    k_dim = 9 * Cp

    kernel = functools.partial(basic_block_kernel, H=H, W=W)
    return pl.pallas_call(
        kernel,
        out_shape=jax.ShapeDtypeStruct((Cp, Ltot), jnp.float32),
        grid=(num_chunks,),
        in_specs=[
            pl.BlockSpec((Cp, Lc), lambda g: (0, g)),
            pl.BlockSpec((2, Cp, k_dim), lambda g: (0, 0, 0)),
            pl.BlockSpec((4, Cp, 1), lambda g: (0, 0, 0)),
        ],
        out_specs=pl.BlockSpec((Cp, Lc), lambda g: (0, g)),
        compiler_params=pltpu.CompilerParams(dimension_semantics=("parallel",)),
    )(x_slab, w_packed, sb)


def nchw_to_slab(x_nchw, Cp, num_images_padded):
    N, C, H, W = x_nchw.shape
    HW = H * W
    xs = jnp.transpose(x_nchw.reshape(N, C, HW), (1, 0, 2)).reshape(C, N * HW)
    slab = jnp.zeros((Cp, num_images_padded * HW), jnp.float32)
    return slab.at[:C, :N * HW].set(xs.astype(jnp.float32))


def slab_to_nchw(slab, N, C, H, W):
    HW = H * W
    out = slab[:C, :N * HW].reshape(C, N, HW)
    return jnp.transpose(out, (1, 0, 2)).reshape(N, C, H, W)


def basic_block_forward(x_nchw, w1_oihw, w2_oihw, bn1_scale, bn1_bias, bn2_scale, bn2_bias,
                        *, num_chunks=None):
    N, C, H, W = x_nchw.shape
    assert w1_oihw.shape[0] == C and w2_oihw.shape == (C, C, 3, 3), \
        "stride=1 / downsample=None block (inplanes == planes)"
    Cp = _round_up(max(C, 8), 8)                        # pad channels to a sublane multiple
    if num_chunks is None:
        num_chunks = 2 if N >= 2 else 1                 # >=2-way parallel axis for v7x dual-TC
    Np = _round_up(N, num_chunks)

    # In a real network the param prep and slab layout live OUTSIDE the per-block step
    # so blocks chain in the padded layout; done here once for the standalone test.
    w_packed, sb = prepare_basic_block_params(
        w1_oihw, w2_oihw, bn1_scale, bn1_bias, bn2_scale, bn2_bias, Cp)
    x_slab = nchw_to_slab(x_nchw, Cp, Np)
    out_slab = basic_block_apply_slab(x_slab, w_packed, sb, H=H, W=W, num_chunks=num_chunks)
    return slab_to_nchw(out_slab, N, C, H, W)


def reference(x_nchw, w1_oihw, w2_oihw, s1, b1, s2, b2):
    def bcast(v):
        return v.reshape(1, -1, 1, 1)
    a = _leaky(x_nchw * bcast(s1) + bcast(b1))
    y = lax.conv_general_dilated(a, w1_oihw, (1, 1), ((1, 1), (1, 1)),
                                 dimension_numbers=("NCHW", "OIHW", "NCHW"))
    z = _leaky(y * bcast(s2) + bcast(b2))
    z = lax.conv_general_dilated(z, w2_oihw, (1, 1), ((1, 1), (1, 1)),
                                 dimension_numbers=("NCHW", "OIHW", "NCHW"))
    return z + x_nchw


if __name__ == "__main__":
    key = jax.random.PRNGKey(0)
    ks = jax.random.split(key, 12)

    # Module config: inplanes = planes = 4, stride = 1, downsample = None
    N, C, H, W = 2, 4, 16, 16
    planes = 4
    eps = 1e-5

    x_nchw = jax.random.normal(ks[0], (N, C, H, W), jnp.float32)

    # conv weights in PyTorch OIHW layout
    w1_oihw = 0.2 * jax.random.normal(ks[1], (planes, C, 3, 3), jnp.float32)
    w2_oihw = 0.2 * jax.random.normal(ks[2], (planes, planes, 3, 3), jnp.float32)

    # BatchNorm (eval-mode) parameters, folded into per-channel scale/bias
    gamma1 = 1.0 + 0.1 * jax.random.normal(ks[3], (C,), jnp.float32)
    beta1 = 0.1 * jax.random.normal(ks[4], (C,), jnp.float32)
    rmean1 = 0.1 * jax.random.normal(ks[5], (C,), jnp.float32)
    rvar1 = 0.5 + jax.random.uniform(ks[6], (C,), jnp.float32)
    gamma2 = 1.0 + 0.1 * jax.random.normal(ks[7], (planes,), jnp.float32)
    beta2 = 0.1 * jax.random.normal(ks[8], (planes,), jnp.float32)
    rmean2 = 0.1 * jax.random.normal(ks[9], (planes,), jnp.float32)
    rvar2 = 0.5 + jax.random.uniform(ks[10], (planes,), jnp.float32)

    s1 = gamma1 / jnp.sqrt(rvar1 + eps)
    b1 = beta1 - rmean1 * s1
    s2 = gamma2 / jnp.sqrt(rvar2 + eps)
    b2 = beta2 - rmean2 * s2

    out = basic_block_forward(x_nchw, w1_oihw, w2_oihw, s1, b1, s2, b2)
    out = jax.block_until_ready(out)

    ref = reference(x_nchw, w1_oihw, w2_oihw, s1, b1, s2, b2)
    scale = float(jnp.max(jnp.abs(ref)))
    err = float(jnp.max(jnp.abs(out - ref)))
    # bf16 MXU operands with f32 accumulation: expect ~1e-2 abs error at this output scale.
    assert err <= 5e-2 * scale + 1e-3, f"max abs error {err} (ref scale {scale})"

    print("KERNEL_OK")
</pallas_src>

<mosaic_0001>
module attributes {stable_mosaic.version = 11 : i64} {
  func.func @basic_block_kernel(%arg0: i32, %arg1: memref<8x256xf32, #tpu.memory_space<vmem>>, %arg2: memref<2x8x72xbf16, #tpu.memory_space<vmem>>, %arg3: memref<4x8x1xf32, #tpu.memory_space<vmem>>, %arg4: memref<8x256xf32, #tpu.memory_space<vmem>>) attributes {dimension_semantics = [#tpu.dimension_semantics<parallel>], iteration_bounds = array<i64: 2>, scalar_prefetch = 0 : i64, scratch_operands = 0 : i64, tpu.core_type = #tpu.core_type<tc>, window_params = [{transform_indices = @transform_0, window_bounds = array<i64: 8, 256>}, {pipeline_mode = #tpu.pipeline_mode<synchronous>, transform_indices = @transform_1, window_bounds = array<i64: 2, 8, 72>}, {pipeline_mode = #tpu.pipeline_mode<synchronous>, transform_indices = @transform_2, window_bounds = array<i64: 4, 8, 1>}, {transform_indices = @transform_3, window_bounds = array<i64: 8, 256>}]} {
    %c0 = arith.constant 0 : index
    %c0_0 = arith.constant 0 : index
    %0 = vector.load %arg1[%c0, %c0_0] : memref<8x256xf32, #tpu.memory_space<vmem>>, vector<8x256xf32>
    %c0_1 = arith.constant 0 : index
    %c0_2 = arith.constant 0 : index
    %c0_3 = arith.constant 0 : index
    %1 = vector.load %arg3[%c0_1, %c0_2, %c0_3] : memref<4x8x1xf32, #tpu.memory_space<vmem>>, vector<1x8x1xf32>
    %2 = vector.shape_cast %1 : vector<1x8x1xf32> to vector<8x1xf32>
    %c1 = arith.constant 1 : index
    %c0_4 = arith.constant 0 : index
    %c0_5 = arith.constant 0 : index
    %3 = vector.load %arg3[%c1, %c0_4, %c0_5] : memref<4x8x1xf32, #tpu.memory_space<vmem>>, vector<1x8x1xf32>
    %4 = vector.shape_cast %3 : vector<1x8x1xf32> to vector<8x1xf32>
    %c2 = arith.constant 2 : index
    %c0_6 = arith.constant 0 : index
    %c0_7 = arith.constant 0 : index
    %5 = vector.load %arg3[%c2, %c0_6, %c0_7] : memref<4x8x1xf32, #tpu.memory_space<vmem>>, vector<1x8x1xf32>
    %6 = vector.shape_cast %5 : vector<1x8x1xf32> to vector<8x1xf32>
    %c3 = arith.constant 3 : index
    %c0_8 = arith.constant 0 : index
    %c0_9 = arith.constant 0 : index
    %7 = vector.load %arg3[%c3, %c0_8, %c0_9] : memref<4x8x1xf32, #tpu.memory_space<vmem>>, vector<1x8x1xf32>
    %8 = vector.shape_cast %7 : vector<1x8x1xf32> to vector<8x1xf32>
    %9 = tpu.iota {dimensions = array<i32: 1>} : vector<1x256xi32>
    %c255_i32 = arith.constant 255 : i32
    %10 = vector.broadcast %c255_i32 : i32 to vector<1x256xi32>
    %11 = arith.andi %9, %10 : vector<1x256xi32>
    %c15_i32 = arith.constant 15 : i32
    %12 = vector.broadcast %c15_i32 : i32 to vector<1x256xi32>
    %13 = arith.andi %11, %12 : vector<1x256xi32>
    %c16_i32 = arith.constant 16 : i32
    %14 = vector.broadcast %c16_i32 : i32 to vector<1x256xi32>
    %15 = arith.cmpi sge, %11, %14 : vector<1x256xi32>
    %c240_i32 = arith.constant 240 : i32
    %16 = vector.broadcast %c240_i32 : i32 to vector<1x256xi32>
    %17 = arith.cmpi slt, %11, %16 : vector<1x256xi32>
    %c1_i32 = arith.constant 1 : i32
    %18 = vector.broadcast %c1_i32 : i32 to vector<1x256xi32>
    %19 = arith.cmpi sge, %13, %18 : vector<1x256xi32>
    %c14_i32 = arith.constant 14 : i32
    %20 = vector.broadcast %c14_i32 : i32 to vector<1x256xi32>
    %21 = arith.cmpi sle, %13, %20 : vector<1x256xi32>
    %22 = vector.broadcast %2 : vector<8x1xf32> to vector<8x256xf32>
    %23 = arith.mulf %0, %22 : vector<8x256xf32>
    %24 = vector.broadcast %4 : vector<8x1xf32> to vector<8x256xf32>
    %25 = arith.addf %23, %24 : vector<8x256xf32>
    %cst = arith.constant 0.000000e+00 : f32
    %26 = vector.broadcast %cst : f32 to vector<8x256xf32>
    %27 = arith.cmpf ogt, %25, %26 : vector<8x256xf32>
    %cst_10 = arith.constant 1.000000e-01 : f32
    %28 = vector.broadcast %cst_10 : f32 to vector<8x256xf32>
    %29 = arith.mulf %28, %25 : vector<8x256xf32>
    %30 = arith.select %27, %25, %29 : vector<8x256xi1>, vector<8x256xf32>
    %c0_11 = arith.constant 0 : index
    %c0_12 = arith.constant 0 : index
    %c0_13 = arith.constant 0 : index
    %31 = vector.load %arg2[%c0_11, %c0_12, %c0_13] : memref<2x8x72xbf16, #tpu.memory_space<vmem>>, vector<1x8x72xbf16>
    %32 = vector.shape_cast %31 : vector<1x8x72xbf16> to vector<8x72xbf16>
    %c17_i32 = arith.constant 17 : i32
    %33 = tpu.dynamic_rotate %30 by %c17_i32 dim 1 : vector<8x256xf32>, i32 -> vector<8x256xf32>
    %34 = arith.andi %15, %19 : vector<1x256xi1>
    %cst_14 = arith.constant 0.000000e+00 : f32
    %35 = vector.shape_cast %34 : vector<1x256xi1> to vector<1x256xi1>
    %36 = vector.broadcast %35 : vector<1x256xi1> to vector<8x256xi1>
    %37 = vector.broadcast %cst_14 : f32 to vector<8x256xf32>
    %38 = arith.select %36, %33, %37 : vector<8x256xi1>, vector<8x256xf32>
    %c16_i32_15 = arith.constant 16 : i32
    %39 = tpu.dynamic_rotate %30 by %c16_i32_15 dim 1 : vector<8x256xf32>, i32 -> vector<8x256xf32>
    %cst_16 = arith.constant 0.000000e+00 : f32
    %40 = vector.shape_cast %15 : vector<1x256xi1> to vector<1x256xi1>
    %41 = vector.broadcast %40 : vector<1x256xi1> to vector<8x256xi1>
    %42 = vector.broadcast %cst_16 : f32 to vector<8x256xf32>
    %43 = arith.select %41, %39, %42 : vector<8x256xi1>, vector<8x256xf32>
    %c15_i32_17 = arith.constant 15 : i32
    %44 = tpu.dynamic_rotate %30 by %c15_i32_17 dim 1 : vector<8x256xf32>, i32 -> vector<8x256xf32>
    %45 = arith.andi %15, %21 : vector<1x256xi1>
    %cst_18 = arith.constant 0.000000e+00 : f32
    %46 = vector.shape_cast %45 : vector<1x256xi1> to vector<1x256xi1>
    %47 = vector.broadcast %46 : vector<1x256xi1> to vector<8x256xi1>
    %48 = vector.broadcast %cst_18 : f32 to vector<8x256xf32>
    %49 = arith.select %47, %44, %48 : vector<8x256xi1>, vector<8x256xf32>
    %c1_i32_19 = arith.constant 1 : i32
    %50 = tpu.dynamic_rotate %30 by %c1_i32_19 dim 1 : vector<8x256xf32>, i32 -> vector<8x256xf32>
    %cst_20 = arith.constant 0.000000e+00 : f32
    %51 = vector.shape_cast %19 : vector<1x256xi1> to vector<1x256xi1>
    %52 = vector.broadcast %51 : vector<1x256xi1> to vector<8x256xi1>
    %53 = vector.broadcast %cst_20 : f32 to vector<8x256xf32>
    %54 = arith.select %52, %50, %53 : vector<8x256xi1>, vector<8x256xf32>
    %c255_i32_21 = arith.constant 255 : i32
    %55 = tpu.dynamic_rotate %30 by %c255_i32_21 dim 1 : vector<8x256xf32>, i32 -> vector<8x256xf32>
    %cst_22 = arith.constant 0.000000e+00 : f32
    %56 = vector.shape_cast %21 : vector<1x256xi1> to vector<1x256xi1>
    %57 = vector.broadcast %56 : vector<1x256xi1> to vector<8x256xi1>
    %58 = vector.broadcast %cst_22 : f32 to vector<8x256xf32>
    %59 = arith.select %57, %55, %58 : vector<8x256xi1>, vector<8x256xf32>
    %c241_i32 = arith.constant 241 : i32
    %60 = tpu.dynamic_rotate %30 by %c241_i32 dim 1 : vector<8x256xf32>, i32 -> vector<8x256xf32>
    %61 = arith.andi %17, %19 : vector<1x256xi1>
    %cst_23 = arith.constant 0.000000e+00 : f32
    %62 = vector.shape_cast %61 : vector<1x256xi1> to vector<1x256xi1>
    %63 = vector.broadcast %62 : vector<1x256xi1> to vector<8x256xi1>
    %64 = vector.broadcast %cst_23 : f32 to vector<8x256xf32>
    %65 = arith.select %63, %60, %64 : vector<8x256xi1>, vector<8x256xf32>
    %c240_i32_24 = arith.constant 240 : i32
    %66 = tpu.dynamic_rotate %30 by %c240_i32_24 dim 1 : vector<8x256xf32>, i32 -> vector<8x256xf32>
    %cst_25 = arith.constant 0.000000e+00 : f32
    %67 = vector.shape_cast %17 : vector<1x256xi1> to vector<1x256xi1>
    %68 = vector.broadcast %67 : vector<1x256xi1> to vector<8x256xi1>
    %69 = vector.broadcast %cst_25 : f32 to vector<8x256xf32>
    %70 = arith.select %68, %66, %69 : vector<8x256xi1>, vector<8x256xf32>
    %c239_i32 = arith.constant 239 : i32
    %71 = tpu.dynamic_rotate %30 by %c239_i32 dim 1 : vector<8x256xf32>, i32 -> vector<8x256xf32>
    %72 = arith.andi %17, %21 : vector<1x256xi1>
    %cst_26 = arith.constant 0.000000e+00 : f32
    %73 = vector.shape_cast %72 : vector<1x256xi1> to vector<1x256xi1>
    %74 = vector.broadcast %73 : vector<1x256xi1> to vector<8x256xi1>
    %75 = vector.broadcast %cst_26 : f32 to vector<8x256xf32>
    %76 = arith.select %74, %71, %75 : vector<8x256xi1>, vector<8x256xf32>
    %77 = tpu.concatenate %38, %43, %49, %54, %30, %59, %65, %70, %76 in 0 : vector<8x256xf32>, vector<8x256xf32>, vector<8x256xf32>, vector<8x256xf32>, vector<8x256xf32>, vector<8x256xf32>, vector<8x256xf32>, vector<8x256xf32>, vector<8x256xf32> -> vector<72x256xf32>
    %78 = arith.truncf %77 : vector<72x256xf32> to vector<72x256xbf16>
    %cst_27 = arith.constant dense<0.000000e+00> : vector<8x256xf32>
    %79 = tpu.matmul %32, %78, %cst_27 {dimension_numbers = #tpu.dot_dimension_numbers<[1], [0], [0], [1], [0, 0, 1, 1], [], []>} : vector<8x72xbf16>, vector<72x256xbf16>, vector<8x256xf32> -> vector<8x256xf32>
    %80 = vector.broadcast %6 : vector<8x1xf32> to vector<8x256xf32>
    %81 = arith.mulf %79, %80 : vector<8x256xf32>
    %82 = vector.broadcast %8 : vector<8x1xf32> to vector<8x256xf32>
    %83 = arith.addf %81, %82 : vector<8x256xf32>
    %cst_28 = arith.constant 0.000000e+00 : f32
    %84 = vector.broadcast %cst_28 : f32 to vector<8x256xf32>
    %85 = arith.cmpf ogt, %83, %84 : vector<8x256xf32>
    %cst_29 = arith.constant 1.000000e-01 : f32
    %86 = vector.broadcast %cst_29 : f32 to vector<8x256xf32>
    %87 = arith.mulf %86, %83 : vector<8x256xf32>
    %88 = arith.select %85, %83, %87 : vector<8x256xi1>, vector<8x256xf32>
    %c1_30 = arith.constant 1 : index
    %c0_31 = arith.constant 0 : index
    %c0_32 = arith.constant 0 : index
    %89 = vector.load %arg2[%c1_30, %c0_31, %c0_32] : memref<2x8x72xbf16, #tpu.memory_space<vmem>>, vector<1x8x72xbf16>
    %90 = vector.shape_cast %89 : vector<1x8x72xbf16> to vector<8x72xbf16>
    %c17_i32_33 = arith.constant 17 : i32
    %91 = tpu.dynamic_rotate %88 by %c17_i32_33 dim 1 : vector<8x256xf32>, i32 -> vector<8x256xf32>
    %92 = arith.andi %15, %19 : vector<1x256xi1>
    %cst_34 = arith.constant 0.000000e+00 : f32
    %93 = vector.shape_cast %92 : vector<1x256xi1> to vector<1x256xi1>
    %94 = vector.broadcast %93 : vector<1x256xi1> to vector<8x256xi1>
    %95 = vector.broadcast %cst_34 : f32 to vector<8x256xf32>
    %96 = arith.select %94, %91, %95 : vector<8x256xi1>, vector<8x256xf32>
    %c16_i32_35 = arith.constant 16 : i32
    %97 = tpu.dynamic_rotate %88 by %c16_i32_35 dim 1 : vector<8x256xf32>, i32 -> vector<8x256xf32>
    %cst_36 = arith.constant 0.000000e+00 : f32
    %98 = vector.shape_cast %15 : vector<1x256xi1> to vector<1x256xi1>
    %99 = vector.broadcast %98 : vector<1x256xi1> to vector<8x256xi1>
    %100 = vector.broadcast %cst_36 : f32 to vector<8x256xf32>
    %101 = arith.select %99, %97, %100 : vector<8x256xi1>, vector<8x256xf32>
    %c15_i32_37 = arith.constant 15 : i32
    %102 = tpu.dynamic_rotate %88 by %c15_i32_37 dim 1 : vector<8x256xf32>, i32 -> vector<8x256xf32>
    %103 = arith.andi %15, %21 : vector<1x256xi1>
    %cst_38 = arith.constant 0.000000e+00 : f32
    %104 = vector.shape_cast %103 : vector<1x256xi1> to vector<1x256xi1>
    %105 = vector.broadcast %104 : vector<1x256xi1> to vector<8x256xi1>
    %106 = vector.broadcast %cst_38 : f32 to vector<8x256xf32>
    %107 = arith.select %105, %102, %106 : vector<8x256xi1>, vector<8x256xf32>
    %c1_i32_39 = arith.constant 1 : i32
    %108 = tpu.dynamic_rotate %88 by %c1_i32_39 dim 1 : vector<8x256xf32>, i32 -> vector<8x256xf32>
    %cst_40 = arith.constant 0.000000e+00 : f32
    %109 = vector.shape_cast %19 : vector<1x256xi1> to vector<1x256xi1>
    %110 = vector.broadcast %109 : vector<1x256xi1> to vector<8x256xi1>
    %111 = vector.broadcast %cst_40 : f32 to vector<8x256xf32>
    %112 = arith.select %110, %108, %111 : vector<8x256xi1>, vector<8x256xf32>
    %c255_i32_41 = arith.constant 255 : i32
    %113 = tpu.dynamic_rotate %88 by %c255_i32_41 dim 1 : vector<8x256xf32>, i32 -> vector<8x256xf32>
    %cst_42 = arith.constant 0.000000e+00 : f32
    %114 = vector.shape_cast %21 : vector<1x256xi1> to vector<1x256xi1>
    %115 = vector.broadcast %114 : vector<1x256xi1> to vector<8x256xi1>
    %116 = vector.broadcast %cst_42 : f32 to vector<8x256xf32>
    %117 = arith.select %115, %113, %116 : vector<8x256xi1>, vector<8x256xf32>
    %c241_i32_43 = arith.constant 241 : i32
    %118 = tpu.dynamic_rotate %88 by %c241_i32_43 dim 1 : vector<8x256xf32>, i32 -> vector<8x256xf32>
    %119 = arith.andi %17, %19 : vector<1x256xi1>
    %cst_44 = arith.constant 0.000000e+00 : f32
    %120 = vector.shape_cast %119 : vector<1x256xi1> to vector<1x256xi1>
    %121 = vector.broadcast %120 : vector<1x256xi1> to vector<8x256xi1>
    %122 = vector.broadcast %cst_44 : f32 to vector<8x256xf32>
    %123 = arith.select %121, %118, %122 : vector<8x256xi1>, vector<8x256xf32>
    %c240_i32_45 = arith.constant 240 : i32
    %124 = tpu.dynamic_rotate %88 by %c240_i32_45 dim 1 : vector<8x256xf32>, i32 -> vector<8x256xf32>
    %cst_46 = arith.constant 0.000000e+00 : f32
    %125 = vector.shape_cast %17 : vector<1x256xi1> to vector<1x256xi1>
    %126 = vector.broadcast %125 : vector<1x256xi1> to vector<8x256xi1>
    %127 = vector.broadcast %cst_46 : f32 to vector<8x256xf32>
    %128 = arith.select %126, %124, %127 : vector<8x256xi1>, vector<8x256xf32>
    %c239_i32_47 = arith.constant 239 : i32
    %129 = tpu.dynamic_rotate %88 by %c239_i32_47 dim 1 : vector<8x256xf32>, i32 -> vector<8x256xf32>
    %130 = arith.andi %17, %21 : vector<1x256xi1>
    %cst_48 = arith.constant 0.000000e+00 : f32
    %131 = vector.shape_cast %130 : vector<1x256xi1> to vector<1x256xi1>
    %132 = vector.broadcast %131 : vector<1x256xi1> to vector<8x256xi1>
    %133 = vector.broadcast %cst_48 : f32 to vector<8x256xf32>
    %134 = arith.select %132, %129, %133 : vector<8x256xi1>, vector<8x256xf32>
    %135 = tpu.concatenate %96, %101, %107, %112, %88, %117, %123, %128, %134 in 0 : vector<8x256xf32>, vector<8x256xf32>, vector<8x256xf32>, vector<8x256xf32>, vector<8x256xf32>, vector<8x256xf32>, vector<8x256xf32>, vector<8x256xf32>, vector<8x256xf32> -> vector<72x256xf32>
    %136 = arith.truncf %135 : vector<72x256xf32> to vector<72x256xbf16>
    %cst_49 = arith.constant dense<0.000000e+00> : vector<8x256xf32>
    %137 = tpu.matmul %90, %136, %cst_49 {dimension_numbers = #tpu.dot_dimension_numbers<[1], [0], [0], [1], [0, 0, 1, 1], [], []>} : vector<8x72xbf16>, vector<72x256xbf16>, vector<8x256xf32> -> vector<8x256xf32>
    %138 = arith.addf %137, %0 : vector<8x256xf32>
    %c0_50 = arith.constant 0 : index
    %c0_51 = arith.constant 0 : index
    %139 = vector.load %arg4[%c0_50, %c0_51] : memref<8x256xf32, #tpu.memory_space<vmem>>, vector<8x256xf32>
    tpu.vector_store %arg4[%c0_50, %c0_51], %138 {strides = array<i32>} : memref<8x256xf32, #tpu.memory_space<vmem>>, vector<8x256xf32>,
    return
  }
  func.func @transform_0(%arg0: i32) -> (i32, i32) {
    %c0_i32 = arith.constant 0 : i32
    %c0_i32_0 = arith.constant 0 : i32
    return %c0_i32, %arg0 : i32, i32
  }
  func.func @transform_1(%arg0: i32) -> (i32, i32, i32) {
    %c0_i32 = arith.constant 0 : i32
    %c0_i32_0 = arith.constant 0 : i32
    %c0_i32_1 = arith.constant 0 : i32
    %c0_i32_2 = arith.constant 0 : i32
    return %c0_i32, %c0_i32_0, %c0_i32_1 : i32, i32, i32
  }
  func.func @transform_2(%arg0: i32) -> (i32, i32, i32) {
    %c0_i32 = arith.constant 0 : i32
    %c0_i32_0 = arith.constant 0 : i32
    %c0_i32_1 = arith.constant 0 : i32
    %c0_i32_2 = arith.constant 0 : i32
    return %c0_i32, %c0_i32_0, %c0_i32_1 : i32, i32, i32
  }
  func.func @transform_3(%arg0: i32) -> (i32, i32) {
    %c0_i32 = arith.constant 0 : i32
    %c0_i32_0 = arith.constant 0 : i32
    return %c0_i32, %arg0 : i32, i32
  }
}

</mosaic_0001>

<bundles_post_ra>
// kernel: tpu_custom_call.1
= control target key start
LH: loop header
LB: loop body
LE: loop exit
PB: predicated region body
PF: predicated region fallthrough
CT: control target
= control target key end

     0   :  { %8 = vsyncpa [#allocation3], 0  ;;  %s1397_s0 = inlined_call_operand.vmem [shape: f32[8,512], index: 0, kind: input, shape index: {}]   ;;  %s1398_s1 = inlined_call_operand.hbm [shape: bf16[2,8,72], index: 1, kind: input, shape index: {}]   ;;  %s1399_s2 = inlined_call_operand.vmem [shape: f32[4,8,1], index: 2, kind: input, shape index: {}]   ;;  %s1400_s3 = inlined_call_operand.hbm [shape: f32[8,512], index: 3, kind: output, shape index: {}]  }
   0x1   :  { %9 = vsyncpa [#allocation4], 0 }
   0x2   :  { %11 = vsyncpa [#allocation4 + $0x1], 0  ;;  %s985_s12 = smov 0   ;;  %s987_s13 = smov 0  }
   0x3   :  { %s989_s14 = smov 0   ;;  %s991_s15 = smov 0  }
   0x4 LB: > { %s1006_s16 = sadd.s32 4294967295, %s949_s15   ;;  %s641_s17 = sadd.s32 4294967294, %s949_s15   ;;  %s949_s15 = sphi %s991_s15, %s1478_s15   ;;  %s945_s14 = sphi %s989_s14, %s1477_s14   ;;  %s941_s13 = sphi %s987_s13, %s1476_s13   ;;  %s937_s12 = sphi %s985_s12, %s1475_s12  }
   0x5   : > { %s1010_s18 = sadd.s32 1, %s949_s15   ;;  %s92_s19 = sadd.s32 1, %s945_s14 }
   0x6   : > { %s89_s20 = ssub.s32 %s949_s15, %s1010_s18  ;;  %p102_p0 = scmp.ne.s32.totalorder %s945_s14, %s941_s13 }
   0x7   : > { %p90_p1 = scmp.eq.s32.totalorder %s89_s20, 0  ;;  %p103_p2 = scmp.eq.s32.totalorder %s1006_s16, 1 }
   0x8   : > { %p108_p3 = scmp.ne.s32.totalorder %s941_s13, %s937_s12  ;;  %p109_p4 = scmp.eq.s32.totalorder %s641_s17, 1 }
   0x9   : > { %s1021_s21 = scalar_select %p90_p1, %s945_s14, %s92_s19  }
   0xa   : > { %p1023_p5 = por %p103_p2, %p102_p0  ;;  %p1027_p6 = por %p109_p4, %p108_p3 }
   0xb   : > { %p642_p7 = scmp.ge.s32.totalorder %s949_s15, 1  ;;  %p116_p8 = scmp.lt.s32.totalorder %s949_s15, 3 }
   0xc   : > { %s1418_s22 = scalar_select %p1023_p5, 1, 0 }
   0xd   : > { %s1419_s23 = scalar_select %p1027_p6, 1, 0 }
   0xe   : > { %p1401_p9 = scmp.eq.s32.totalorder %s1006_s16, 0  ;;  %p1034_p10 = pnand %p642_p7, %p116_p8 }
   0xf   : > { %s951_s25 = smov [#allocation2]   ;;  %s855_s30 = scalar_lea.hbm %s1398_s1, 128 }
  0x10   : > { %s1420_s24 = scalar_select %p1034_p10, 1, 0 }
  0x11   : > { %s128_s26 = sshll.u32 %s951_s25, 4  ;;  %p717_p11 = pneg %p1034_p10  ;;  %s129_s26 = int_to_ptr.vmem [resolvable:$true] %s128_s26 }
  0x12   : > { %p856_p13 = scmp.ne.s32.totalorder %s1398_s1, %s855_s30  ;;  %p862_p3 = scmp.lt.u32.totalorder %s855_s30, %s1398_s1 }
  0x13   : > { %p1042_p12 = pnand %p1401_p9, %p717_p11 }
  0x15   : > { %p857_p0 = pneg %p1042_p12 }
  0x17   : > { %p858_p1 = pnand %p857_p0, %p856_p13 }
  0x19   : > { %p859_p2 = pneg %p858_p1 }
  0x1b   : > { %p864_p4 = pnand %p862_p3, %p859_p2 }
  0x1d   : > { %867 = shalt.err (!%p864_p4)
}
  0x1e   : > { %s868_s8 = scalar_lea.vmem %s129_s26, 128  ;;  %p876_p9 = scmp.lt.s32.totalorder %s129_s26, %s129_s26 }
  0x1f   : > { %p869_p7 = scmp.ne.s32.totalorder %s129_s26, %s868_s8  ;;  %p877_p6 = scmp.lt.s32.totalorder %s868_s8, %s868_s8 }
  0x21   : > { %p871_p8 = pnand %p869_p7, %p857_p0  ;;  %p878_p5 = por %p877_p6, %p876_p9 }
  0x23   : > { %p872_p11 = pneg %p871_p8 }
  0x25   : > { %p879_p10 = pnand %p878_p5, %p872_p11 }
  0x27   : > { %882 = shalt.err (!%p879_p10)
}
  0x28   : > { %s952_s9 = smov 64   ;;  %s953_s10 = smov 4  }
  0x29   : > { %720 = dma.hbm_to_vmem [thread:$0]  (!%p1042_p12), %s1398_s1, 128, %s129_s26, [#allocation3], %s952_s9, %s952_s9, %s953_s10  }
  0x2a   : > { %p1422_p13 = scmp.ne.s32.totalorder %s1420_s24, 0 }
  0x2b   : > { %p1423_p1 = scmp.eq.s32.totalorder (!%p1422_p13), %s1006_s16, 0 }
  0x2c   : > { %156 = sbr.rel (%p1422_p13) target bundleno = 929 (0x3a1), region = 32 }
  0x33   : > { %928 = dma.done.wait (%p1423_p1), [#allocation3], 128   ;;  %p1424_p0 = pmov %p1423_p1 }
  0x34   : > { %v954_v0 = vmov 0   ;;  %v190_v1 = vld [vmem:[%s1399_s2] sm:$0xff]  ;;  %v650_v2 = vld [vmem:[%s1399_s2 + $0x8] sm:$0xff]  ;;  %s648_s26 = sshll.u32 %s1006_s16, 1  ;;  %s955_s4 = smov 15   ;;  %v651_v16 = vld [vmem:[%s1399_s2 + $0x10] sm:$0xff]  ;;  %v197_v18 = vlaneseq }
  0x35   : > { %930 = vsyncadd (%p1424_p0), [#allocation3], 4294967168  ;;  %773 = vset.pattern.permute.xlu0 %v954_v0  ;;  %398 = vmatprep.mubr.bf16.mxu0 %v954_v0  ;;  %p181_p5 = scmp.lt.s32.totalorder %s648_s26, 3  ;;  %s956_s5 = smov 17   ;;  %v652_v17 = vld [vmem:[%s1399_s2 + $0x18] sm:$0xff]  ;;  %vm963_vm11 = vmmov 1  }
  0x36   : > { %814 = vset.pattern.permute.xlu1 %v954_v0  ;;  %544 = vmatprep.mubr.bf16.mxu1 %v954_v0  ;;  %s957_s6 = smov 127   ;;  %s958_s7 = smov 16   ;;  %v1104_v19 = vand.u32 127, %v197_v18 }
  0x37   : > { %214 = vperm.xlu0 %773, %v190_v1   ;;  %s1480_s26 = smov (!%p181_p5, %s648_s26), 3  ;;  %s959_s8 = smov 112  }
  0x38   : > { %s649_s27 = sshll.u32 %s1480_s26, 3  ;;  %s960_s9 = smov 1   ;;  %v199_v20 = vadd.s32 128, %v1104_v19  ;;  %v200_v21 = vand.u32 255, %v1104_v19  ;;  %vm1408_vm4 = vcmp.lt.s32.totalorder %v1104_v19, 17  ;;  %vm1404_vm5 = vcmp.lt.s32.totalorder %v1104_v19, 15 }
  0x39   : > { %s184_s30 = scalar_lea.vmem %s1397_s0, %s649_s27  ;;  %s961_s17 = smov 113   ;;  %vm1405_vm7 = vcmp.lt.s32.totalorder %v1104_v19, 16  ;;  %vm1409_vm8 = vcmp.lt.s32.totalorder %v1104_v19, 127  ;;  %vm1406_vm13 = vcmp.lt.s32.totalorder %v1104_v19, 1 }
  0x3a   : > { %v1078_v4 = vld [vmem:[%s184_s30] sm:$0xff]  ;;  %v1080_v5 = vld [vmem:[%s184_s30 + $0x8] sm:$0xff]  ;;  %s962_s19 = smov 111   ;;  %v201_v22 = vand.u32 255, %v199_v20  ;;  %v1108_v23 = vand.u32 15, %v200_v21  ;;  %vm1112_vm2 = vcmp.ge.s32.totalorder %v200_v21, 16 }
  0x3b   : > { %221 = vperm.xlu0 %773, %v650_v2   ;;  %s177_s24 = sand.u32 1, %s941_s13   ;;  %s710_s27 = sshll.u32 %s1006_s16, 8 }
  0x3c   : > { %v1110_v26 = vand.u32 15, %v201_v22  ;;  %vm1410_vm3 = vcmp.ge.s32.totalorder %v1108_v23, 1  ;;  %vm1411_vm10 = vcmp.le.s32.totalorder %v1108_v23, 14  ;;  %s647_s26 = sshll.u32 %s177_s24, 4  ;;  %s556_s16 = scalar_lea.sflag [#allocation4], %s177_s24 }
  0x3d   : > { %vm1126_vm9 = vmand %vm1112_vm2, %vm1410_vm3  ;;  %s179_s28 = scalar_lea.vmem [#allocation5], %s647_s26  ;;  %p1473_p9 = scmp.ne.s32.totalorder %s1418_s22, 0 }
  0x3e   : > { %vm209_vm6 = vcmp.ge.s32.totalorder %v1110_v26, 1  ;;  %vm1407_vm14 = vmpackc.low %vm1112_vm2, %vm1126_vm9  ;;  %vm211_vm15 = vcmp.le.s32.totalorder %v1110_v26, 14  ;;  %s570_s29 = sshll.u32 %s179_s28, 4  ;;  %s1357_s29 = int_to_ptr.vmem [resolvable:$true] %s570_s29 }
  0x3f   : > { %vm1140_vm12 = vmpackc.low %vm963_vm11, %vm209_vm6 }
  0xb6   : > { %v215_v3 = vpop.permute.xlu0 %214 }
  0xb7   : > { %v217_v6 = vmul.f32 %v215_v3, %v1078_v4  ;;  %v218_v7 = vmul.f32 %v215_v3, %v1080_v5 }
  0xba   : > { %v222_v8 = vpop.permute.xlu0 %221 }
  0xbb   : > { %v224_v9 = vadd.f32 %v222_v8, %v217_v6  ;;  %v225_v10 = vadd.f32 %v222_v8, %v218_v7 }
  0xbd   : > { %vm226_vm0 = vcmp.gt.f32.partialorder %v224_v9, 0.0  ;;  %vm227_vm1 = vcmp.gt.f32.partialorder %v225_v10, 0.0  ;;  %v228_v11 = vmul.f32 0.1, %v224_v9  ;;  %v229_v12 = vmul.f32 0.1, %v225_v10 }
  0xbf   : > { %v1084_v13 = vsel %vm226_vm0, %v224_v9, %v228_v11  ;;  %v1086_v14 = vsel %vm227_vm1, %v225_v10, %v229_v12  ;;  %vm1156_vm0 = vmand %vm1112_vm2, %vm1411_vm10  ;;  %vm1164_vm1 = vcmp.lt.s32.totalorder %v201_v22, 240  ;;  %v428_v11 = vld [vmem:[#allocation2 + $0x4] sm:$0xf] }
  0xc0   : > { %v784_v15 = vpack.i.bf16 %v1086_v14, %v1084_v13 }
  0xc2   : > { %785 = vrot.lane.b32.xlu0 %v784_v15, %s955_s4  ;;  %775 = vrot.lane.b32.xlu1 %v784_v15, %s956_s5 }
  0xc6   : > { %795 = vrot.lane.b32.xlu0 %v784_v15, %s957_s6  ;;  %780 = vrot.lane.b32.xlu1 %v784_v15, %s958_s7 }
  0xca   : > { %805 = vrot.lane.b32.xlu0 %v784_v15, %s959_s8  ;;  %790 = vrot.lane.b32.xlu1 %v784_v15, %s960_s9 }
  0xce   : > { %409 = vperm.xlu0 %773, %v651_v16   ;;  %800 = vrot.lane.b32.xlu1 %v784_v15, %s961_s17 }
  0xd2   : > { %810 = vrot.lane.b32.xlu1 %v784_v15, %s962_s19 }
  0xd6   : > { %416 = vperm.xlu1 %814, %v652_v17  }
 0x134   : > { %v786_v24 = vpop.permute.xlu0 %785  ;;  %v776_v25 = vpop.permute.xlu1 %775 }
 0x135   : > { %v778_v27 = vunpack.i.h.bf16 %v776_v25  ;;  %v777_v28 = vunpack.i.l.bf16 %v776_v25  ;;  %v788_v35 = vunpack.i.h.bf16 %v786_v24  ;;  %v787_v36 = vunpack.i.l.bf16 %v786_v24 }
 0x137   : > { %v238_v37 = vsel %vm1408_vm4, %v777_v28, %v778_v27  ;;  %v239_v38 = vsel %vm1408_vm4, %v778_v27, %v777_v28  ;;  %v266_v50 = vsel %vm1404_vm5, %v787_v36, %v788_v35  ;;  %v267_v53 = vsel %vm1404_vm5, %v788_v35, %v787_v36  ;;  %vm1185_vm5 = vmpackc.low %vm209_vm6, %vm211_vm15 }
 0x138   : > { %v796_v30 = vpop.permute.xlu0 %795  ;;  %v781_v31 = vpop.permute.xlu1 %780  ;;  %vm1215_vm4 = vmand %vm1164_vm1, %vm209_vm6 }
 0x139   : > { %v783_v32 = vunpack.i.h.bf16 %v781_v31  ;;  %v782_v33 = vunpack.i.l.bf16 %v781_v31  ;;  %v798_v39 = vunpack.i.h.bf16 %v796_v30  ;;  %v797_v40 = vunpack.i.l.bf16 %v796_v30  ;;  %vm1237_vm6 = vmand %vm1164_vm1, %vm211_vm15  ;;  %v232_v31 = vld [vmem:[#allocation2] sm:$0xf] }
 0x13b   : > { %v253_v41 = vsel %vm1405_vm7, %v782_v33, %v783_v32  ;;  %v254_v43 = vsel %vm1405_vm7, %v783_v32, %v782_v33  ;;  %v295_v54 = vsel %vm1409_vm8, %v798_v39, %v797_v40  ;;  %vm1412_vm7 = vcmp.lt.s32.totalorder %v1104_v19, 113 }
 0x13c   : > { %v791_v44 = vpop.permute.xlu1 %790  ;;  %v654_v45 = vpack.c.bf16 %v253_v41, %v238_v37  ;;  %v657_v46 = vpack.c.bf16 %v254_v43, %v239_v38  ;;  %v806_v51 = vpop.permute.xlu0 %805  ;;  %v294_v3 = vsel %vm1409_vm8, %v797_v40, %v798_v39  ;;  %v666_v6 = vpack.c.bf16 %v295_v54, %v1086_v14  ;;  %vm1226_vm8 = vmpackc.low %vm1411_vm10, %vm963_vm11 }
 0x13d   : > { %v793_v47 = vunpack.i.h.bf16 %v791_v44  ;;  %v792_v48 = vunpack.i.l.bf16 %v791_v44  ;;  %v808_v62 = vunpack.i.h.bf16 %v806_v51  ;;  %v807_v63 = vunpack.i.l.bf16 %v806_v51  ;;  %vm1417_vm10 = vmpackc.low %vm1164_vm1, %vm1215_vm4 }
 0x13e   : > { %655 = vmatprep.subr.msk.bf16.mxu0 %vm1140_vm12, %v654_v45  ;;  %v669_v12 = vpack.c.bf16 %v294_v3, %v1084_v13 }
 0x13f   : > { %v281_v55 = vsel %vm1406_vm13, %v792_v48, %v793_v47  ;;  %v282_v56 = vsel %vm1406_vm13, %v793_v47, %v792_v48  ;;  %658 = vmatpush1.bf16.msk.msra.mxu0 %vm1407_vm14, %v657_v46  ;;  %vm1194_vm13 = vmpackc.low %vm1410_vm3, %vm1156_vm0  ;;  %vm1414_vm0 = vcmp.lt.s32.totalorder %v1104_v19, 112  ;;  %vm1413_vm3 = vcmp.lt.s32.totalorder %v1104_v19, 111 }
 0x140   : > { %v660_v58 = vpack.c.bf16 %v281_v55, %v266_v50  ;;  %v663_v59 = vpack.c.bf16 %v282_v56, %v267_v53  ;;  %v801_v60 = vpop.permute.xlu1 %800  ;;  %vm1201_vm14 = vmpackc.low %vm211_vm15, %vm963_vm11  ;;  %v323_v14 = vsel %vm1414_vm0, %v808_v62, %v807_v63  ;;  %v322_v21 = vsel %vm1414_vm0, %v807_v63, %v808_v62 }
 0x141   : > { %v803_v0 = vunpack.i.h.bf16 %v801_v60  ;;  %v802_v1 = vunpack.i.l.bf16 %v801_v60  ;;  %vm1447_vm15 = vcmp.ge.s32.totalorder %v1108_v23, 1  ;;  %vm1416_vm0 = vcmask 1043456  }
 0x142   : > { %661 = vmatprep.subr.msk.bf16.mxu0 %vm1185_vm5, %v660_v58 }
 0x143   : > { %v308_v8 = vsel %vm1412_vm7, %v803_v0, %v802_v1  ;;  %664 = vmatpush1.bf16.msk.msra.mxu0 %vm1194_vm13, %v663_v59  ;;  %v307_v17 = vsel %vm1412_vm7, %v802_v1, %v803_v0  ;;  %vm1266_vm7 = vmpackc.low %vm963_vm11, %vm1447_vm15  ;;  %vm1415_vm11 = vcmask 588800  }
 0x144   : > { %v811_v10 = vpop.permute.xlu1 %810  ;;  %667 = vmatprep.subr.msk.bf16.mxu0 %vm1201_vm14, %v666_v6  ;;  %v672_v18 = vpack.c.bf16 %v323_v14, %v308_v8  ;;  %v675_v26 = vpack.c.bf16 %v322_v21, %v307_v17 }
 0x145   : > { %v813_v15 = vunpack.i.h.bf16 %v811_v10  ;;  %v812_v16 = vunpack.i.l.bf16 %v811_v10 }
 0x147   : > { %v336_v20 = vsel %vm1413_vm3, %v813_v15, %v812_v16  ;;  %670 = vmatpush1.bf16.msk.msra.mxu0 %vm1226_vm8, %v669_v12  ;;  %v335_v13 = vsel %vm1413_vm3, %v812_v16, %v813_v15  ;;  %vm1450_vm3 = vcmp.le.s32.totalorder %v1108_v23, 14 }
 0x148   : > { %673 = vmatprep.subr.msk.bf16.mxu0 %vm1417_vm10, %v672_v18  ;;  %v344_v24 = vsel %vm1237_vm6, %v336_v20, 0.0  ;;  %v343_v25 = vsel %vm1450_vm3, %v335_v13, 0.0  ;;  %vm1459_vm10 = vmpackc.low %vm1112_vm2, %vm1126_vm9  ;;  %vm1462_vm2 = vcmp.lt.s32.totalorder %v1104_v19, 113  ;;  %vm1464_vm9 = vcmp.lt.s32.totalorder %v1104_v19, 111 }
 0x149   : > { %v354_v27 = vpack.c.bf16 %v344_v24, %v344_v24  ;;  %v353_v28 = vpack.c.bf16 %v343_v25, %v343_v25 }
 0x14b   : > { %676 = vmatpush1.bf16.msk.msra.mxu0 %vm1266_vm7, %v675_v26  ;;  %v361_v30 = vsel %vm1416_vm0, %v353_v28, 0 }
 0x14c   : > { %677 = vmatprep.subr.msk.bf16.mxu0 %vm1416_vm0, %v354_v27 }
 0x14d   : > { %v410_v32 = vpop.permute.xlu0 %409 }
 0x14f   : > { %375 = vmatpush1.bf16.msra.mxu0 %v361_v30 }
 0x152   : > { %678 = vmatmul.mubr.msk.bf16.vlgmr.msra.gmra.mrb[0].mxu0 %vm1415_vm11, %v232_v31 }
 0x155   : > { %v417_v35 = vpop.permute.xlu1 %416 }
 0x225   : > { %v400_v33 = vpop.f32.mrb[0].mxu0 }
 0x226   : > { %v412_v36 = vmul.f32 %v410_v32, %v400_v33  ;;  %v402_v37 = vpop.f32.mrb[1].mxu0 }
 0x227   : > { %v413_v38 = vmul.f32 %v410_v32, %v402_v37  ;;  %v404_v39 = vpop.f32.mrb[2].mxu0 }
 0x228   : > { %v419_v40 = vadd.f32 %v417_v35, %v412_v36  ;;  %v405_v41 = vpop.f32.mrb[3].mxu0 }
 0x229   : > { %v420_v43 = vadd.f32 %v417_v35, %v413_v38 }
 0x22a   : > { %vm421_vm3 = vcmp.gt.f32.partialorder %v419_v40, 0.0  ;;  %v423_v44 = vmul.f32 0.1, %v419_v40 }
 0x22b   : > { %vm422_vm15 = vcmp.gt.f32.partialorder %v420_v43, 0.0  ;;  %v424_v45 = vmul.f32 0.1, %v420_v43 }
 0x22c   : > { %v425_v46 = vsel %vm421_vm3, %v419_v40, %v423_v44  ;;  %vm1451_vm3 = vcmp.lt.s32.totalorder %v1104_v19, 17 }
 0x22d   : > { %v426_v47 = vsel %vm422_vm15, %v420_v43, %v424_v45  ;;  %vm1452_vm15 = vcmp.lt.s32.totalorder %v1104_v19, 16  ;;  %vm1453_vm11 = vmmov %vm1451_vm3 }
 0x22e   : > { %v820_v48 = vpack.i.bf16 %v426_v47, %v425_v46  ;;  %vm1454_vm0 = vmmov %vm1452_vm15 }
 0x230   : > { %821 = vrot.lane.b32.xlu1 %v820_v48, %s958_s7  ;;  %816 = vrot.lane.b32.xlu0 %v820_v48, %s956_s5  ;;  %s1355_s5 = scalar_lea.hbm %s1400_s3, %s710_s27  ;;  %s964_s7 = smov [#allocation5]  }
 0x234   : > { %831 = vrot.lane.b32.xlu1 %v820_v48, %s960_s9  ;;  %826 = vrot.lane.b32.xlu0 %v820_v48, %s955_s4 }
 0x238   : > { %841 = vrot.lane.b32.xlu1 %v820_v48, %s961_s17  ;;  %836 = vrot.lane.b32.xlu0 %v820_v48, %s957_s6  ;;  %s883_s6 = scalar_lea.vmem %s1357_s29, 256 }
 0x239   : > { %p884_p6 = scmp.ne.s32.totalorder %s1357_s29, %s883_s6 }
 0x23b   : > { %p885_p10 = pnand %p884_p6, %p1473_p9 }
 0x23c   : > { %851 = vrot.lane.b32.xlu1 %v820_v48, %s962_s19  ;;  %846 = vrot.lane.b32.xlu0 %v820_v48, %s959_s8  ;;  %s887_s8 = sshll.u32 %s964_s7, 4  ;;  %s888_s8 = int_to_ptr.vmem [resolvable:$false] %s887_s8 }
 0x23d   : > { %p886_p12 = pneg %p885_p10  ;;  %s889_s9 = scalar_lea.vmem %s888_s8, 512 }
 0x23e   : > { %p890_p2 = scmp.lt.s32.totalorder %s1357_s29, %s888_s8  ;;  %p891_p3 = scmp.lt.s32.totalorder %s889_s9, %s883_s6 }
 0x240   : > { %p892_p4 = por %p891_p3, %p890_p2 }
 0x242   : > { %p893_p7 = pnand %p892_p4, %p886_p12 }
 0x2a2   : > { %v822_v49 = vpop.permute.xlu1 %821  ;;  %v817_v50 = vpop.permute.xlu0 %816 }
 0x2a3   : > { %v824_v51 = vunpack.i.h.bf16 %v822_v49  ;;  %v823_v53 = vunpack.i.l.bf16 %v822_v49  ;;  %v819_v54 = vunpack.i.h.bf16 %v817_v50  ;;  %v818_v55 = vunpack.i.l.bf16 %v817_v50 }
 0x2a5   : > { %v433_v56 = vsel %vm1451_vm3, %v818_v55, %v819_v54  ;;  %v441_v58 = vsel %vm1452_vm15, %v823_v53, %v824_v51  ;;  %v434_v59 = vsel %vm1453_vm11, %v819_v54, %v818_v55  ;;  %v442_v60 = vsel %vm1454_vm0, %v824_v51, %v823_v53 }
 0x2a6   : > { %v832_v62 = vpop.permute.xlu1 %831  ;;  %v827_v63 = vpop.permute.xlu0 %826  ;;  %v680_v0 = vpack.c.bf16 %v441_v58, %v433_v56  ;;  %v683_v1 = vpack.c.bf16 %v442_v60, %v434_v59  ;;  %vm1455_vm3 = vcmp.lt.s32.totalorder %v1104_v19, 1  ;;  %vm1457_vm11 = vcmp.lt.s32.totalorder %v1104_v19, 15 }
 0x2a7   : > { %v834_v3 = vunpack.i.h.bf16 %v832_v62  ;;  %v833_v6 = vunpack.i.l.bf16 %v832_v62  ;;  %v829_v8 = vunpack.i.h.bf16 %v827_v63  ;;  %v828_v10 = vunpack.i.l.bf16 %v827_v63  ;;  %vm1456_vm15 = vmmov %vm1455_vm3 }
 0x2a8   : > { %681 = vmatprep.subr.msk.bf16.mxu1 %vm1140_vm12, %v680_v0  ;;  %vm1458_vm0 = vmmov %vm1457_vm11  ;;  %vm1460_vm12 = vcmp.lt.s32.totalorder %v1104_v19, 127 }
 0x2a9   : > { %v457_v12 = vsel %vm1455_vm3, %v833_v6, %v834_v3  ;;  %v458_v14 = vsel %vm1456_vm15, %v834_v3, %v833_v6  ;;  %v449_v15 = vsel %vm1457_vm11, %v828_v10, %v829_v8  ;;  %v450_v16 = vsel %vm1458_vm0, %v829_v8, %v828_v10  ;;  %684 = vmatpush1.bf16.msk.msra.mxu1 %vm1459_vm10, %v683_v1  ;;  %vm1461_vm3 = vmmov %vm1460_vm12 }
 0x2aa   : > { %v686_v42 = vpack.c.bf16 %v457_v12, %v449_v15  ;;  %v689_v17 = vpack.c.bf16 %v458_v14, %v450_v16  ;;  %v842_v18 = vpop.permute.xlu1 %841  ;;  %v837_v20 = vpop.permute.xlu0 %836  ;;  %vm1465_vm10 = vcmp.lt.s32.totalorder %v1104_v19, 112  ;;  %vm1467_vm15 = vmmov %vm1464_vm9 }
 0x2ab   : > { %v839_v13 = vunpack.i.h.bf16 %v837_v20  ;;  %v838_v21 = vunpack.i.l.bf16 %v837_v20  ;;  %v844_v24 = vunpack.i.h.bf16 %v842_v18  ;;  %v843_v25 = vunpack.i.l.bf16 %v842_v18  ;;  %vm1469_vm11 = vmpackc.low %vm1164_vm1, %vm1215_vm4 }
 0x2ac   : > { %687 = vmatprep.subr.msk.bf16.mxu1 %vm1185_vm5, %v686_v42  ;;  %vm1463_vm5 = vmmov %vm1462_vm2 }
 0x2ad   : > { %v465_v26 = vsel %vm1460_vm12, %v838_v21, %v839_v13  ;;  %v466_v29 = vsel %vm1461_vm3, %v839_v13, %v838_v21  ;;  %690 = vmatpush1.bf16.msk.msra.mxu1 %vm1194_vm13, %v689_v17  ;;  %v473_v57 = vsel %vm1462_vm2, %v843_v25, %v844_v24  ;;  %v474_v36 = vsel %vm1463_vm5, %v844_v24, %v843_v25  ;;  %vm1466_vm13 = vmmov %vm1465_vm10 }
 0x2ae   : > { %v692_v34 = vpack.c.bf16 %v466_v29, %v426_v47  ;;  %v695_v27 = vpack.c.bf16 %v465_v26, %v425_v46  ;;  %v852_v28 = vpop.permute.xlu1 %851  ;;  %v847_v30 = vpop.permute.xlu0 %846 }
 0x2af   : > { %v854_v31 = vunpack.i.h.bf16 %v852_v28  ;;  %v853_v32 = vunpack.i.l.bf16 %v852_v28  ;;  %v849_v33 = vunpack.i.h.bf16 %v847_v30  ;;  %v848_v35 = vunpack.i.l.bf16 %v847_v30 }
 0x2b0   : > { %693 = vmatprep.subr.msk.bf16.mxu1 %vm1201_vm14, %v692_v34  ;;  %vm1468_vm14 = vcmp.le.s32.totalorder %v1108_v23, 14 }
 0x2b1   : > { %v490_v61 = vsel %vm1464_vm9, %v854_v31, %v853_v32  ;;  %v481_v37 = vsel %vm1465_vm10, %v848_v35, %v849_v33  ;;  %v482_v38 = vsel %vm1466_vm13, %v849_v33, %v848_v35  ;;  %696 = vmatpush1.bf16.msk.msra.mxu1 %vm1226_vm8, %v695_v27  ;;  %v489_v39 = vsel %vm1467_vm15, %v853_v32, %v854_v31 }
 0x2b2   : > { %v492_v2 = vsel %vm1237_vm6, %v490_v61, 0.0  ;;  %v698_v40 = vpack.c.bf16 %v482_v38, %v474_v36  ;;  %v701_v41 = vpack.c.bf16 %v481_v37, %v473_v57  ;;  %v491_v43 = vsel %vm1468_vm14, %v489_v39, 0.0 }
 0x2b3   : > { %v502_v44 = vpack.c.bf16 %v492_v2, %v492_v2  ;;  %v501_v9 = vpack.c.bf16 %v491_v43, %v491_v43  ;;  %vm1470_vm8 = vcmask 1043456   ;;  %vm1472_vm6 = vcmask 588800  }
 0x2b4   : > { %699 = vmatprep.subr.msk.bf16.mxu1 %vm1469_vm11, %v698_v40  ;;  %vm1471_vm0 = vmmov %vm1470_vm8 }
 0x2b5   : > { %702 = vmatpush1.bf16.msk.msra.mxu1 %vm1266_vm7, %v701_v41  ;;  %v507_v19 = vsel %vm1471_vm0, %v501_v9, 0 }
 0x2b6   : > { %703 = vmatprep.subr.msk.bf16.mxu1 %vm1470_vm8, %v502_v44 }
 0x2b9   : > { %521 = vmatpush1.bf16.msra.mxu1 %v507_v19 }
 0x2bc   : > { %704 = vmatmul.mubr.msk.bf16.vlgmr.msra.gmra.mrb[0].mxu1 %vm1472_vm6, %v428_v11 }
 0x38f   : > { %v546_v23 = vpop.f32.mrb[0].mxu1 }
 0x390   : > { %v547_v52 = vadd.f32 %v546_v23, %v1078_v4  ;;  %v548_v7 = vpop.f32.mrb[1].mxu1 }
 0x391   : > { %v549_v22 = vadd.f32 %v548_v7, %v1080_v5  ;;  %v550_v45 = vpop.f32.mrb[2].mxu1 }
 0x392   : > { %553 = vst [vmem:[%s179_s28] sm:$0xff] %v547_v52  ;;  %v551_v46 = vpop.f32.mrb[3].mxu1 }
 0x393   : > { %554 = vst [vmem:[%s179_s28 + $0x8] sm:$0xff] %v549_v22 }
 0x394   : > { %896 = shalt.err (!%p893_p7)
}
 0x395   : > { %s897_s10 = scalar_lea.hbm %s1355_s5, 256  ;;  %s901_s19 = scalar_lea.hbm %s1400_s3, 512 }
 0x396   : > { %p898_p8 = scmp.ne.s32.totalorder %s1355_s5, %s897_s10  ;;  %p902_p1 = scmp.lt.u32.totalorder %s1355_s5, %s1400_s3 }
 0x397   : > { %p903_p0 = scmp.lt.u32.totalorder %s901_s19, %s897_s10  ;;  %p905_p6 = scmp.lt.u32.totalorder %s897_s10, %s1355_s5 }
 0x398   : > { %p899_p11 = pnand %p898_p8, %p1473_p9 }
 0x399   : > { %p904_p5 = por %p903_p0, %p902_p1 }
 0x39a   : > { %p900_p13 = pneg %p899_p11 }
 0x39b   : > { %p906_p10 = por %p905_p6, %p904_p5 }
 0x39d   : > { %p907_p12 = pnand %p906_p10, %p900_p13 }
 0x39f   : > { %910 = shalt.err (!%p907_p12)
}
 0x3a0   : > { %715 = dma.vmem_to_hbm [thread:$0]  (%p1473_p9), %s1357_s29, 256, %s1355_s5, %s556_s16  }
 0x3a1 PF: > { %p727_p2 = scmp.ge.s32.totalorder %s949_s15, 2  ;;  %s582_s24 = sand.u32 1, %s937_s12  }
 0x3a2   : > { %p1474_p3 = scmp.ne.s32.totalorder %s1419_s23, 0  ;;  %s583_s26 = scalar_lea.sflag [#allocation4], %s582_s24 }
 0x3a4   : > { %p722_p4 = pnand %p727_p2, %p1474_p3 }
 0x3a6   : > { %932 = dma.done.wait (!%p722_p4), %s583_s26, 256  }
 0x3a7   : > { %934 = vsyncadd (!%p722_p4), %s583_s26, 4294967040  ;;  %p14_p7 = scmp.ge.s32.totalorder %s1010_s18, 4   ;;  %s1475_s12 = smov %s941_s13 }
 0x3a8   : > { %s1476_s13 = smov %s945_s14  ;;  %s1477_s14 = smov %s1021_s21 }
 0x3a9   : > { %s1478_s15 = smov %s1010_s18  ;;  %16 = sbr.rel (!%p14_p7) target bundleno = 4 (0x4), region = 76 }
 0x3b0   :  { %588 = vsyncpa [#allocation3], 1 }
 0x3b1   :  { %590 = vsyncpa [#allocation3 + $0x1], 1 }
 0x3b2   :  { %591 = vsyncpa [#allocation4], 1 }
 0x3b3   :  { %593 = vsyncpa [#allocation4 + $0x1], 1 }

</bundles_post_ra>
